<compile_context>
chip_gen: v6e
topology: v6e:2x2x1
jax: 0.10.0
libtpu: 0.0.40
codegen_flags: <defaults>
</compile_context>

<pallas_src>
import jax
import jax.numpy as jnp
from jax.experimental import pallas as pl
from jax.experimental.pallas import tpu as pltpu


def _round_up(x, m):
    return ((x + m - 1) // m) * m


def fc_forward(x, w, *, block_b=256, block_k=512):
    """softmax(x @ w.T, axis=1) with PyTorch-layout weight w: (out, in)."""
    B, in_size = x.shape
    out_size, in_size_w = w.shape
    assert in_size == in_size_w
    out_dtype = x.dtype

    # bf16 operands for the MXU; accumulation stays f32 inside the kernel.
    xb = x.astype(jnp.bfloat16)
    wb = w.astype(jnp.bfloat16)

    # Tile / pad sizes: lane-dense (128-multiple) N and K, sublane-aligned B tile.
    n_pad = _round_up(out_size, 128)
    tb = min(block_b, _round_up(B, 8))
    tk = min(block_k, _round_up(in_size, 128))

    # Keep the VMEM working set (double-buffered tiles + f32 accumulator)
    # comfortably inside the default scoped-VMEM limit on all chips.
    out_isz = jnp.dtype(out_dtype).itemsize

    def _vmem_bytes(tb_, tk_):
        x_tile = 2 * tb_ * tk_ * 2          # bf16, double-buffered
        w_tile = 2 * n_pad * tk_ * 2        # bf16, double-buffered
        o_tile = 2 * tb_ * n_pad * out_isz  # double-buffered output tile
        acc = tb_ * n_pad * 4               # f32 accumulator scratch
        return x_tile + w_tile + o_tile + acc

    budget = 24 * 1024 * 1024
    while _vmem_bytes(tb, tk) > budget and tk > 128:
        tk = max(128, _round_up(tk // 2, 128))
    while _vmem_bytes(tb, tk) > budget and tb > 8:
        tb = max(8, _round_up(tb // 2, 8))

    b_pad = _round_up(B, tb)
    k_pad = _round_up(in_size, tk)
    nb = b_pad // tb
    nk = k_pad // tk

    # Zero padding is exact for the contraction; padded output lanes are masked
    # in-kernel before the softmax, padded batch rows are sliced off below.
    if b_pad != B or k_pad != in_size:
        xb = jnp.pad(xb, ((0, b_pad - B), (0, k_pad - in_size)))
    if n_pad != out_size or k_pad != in_size:
        wb = jnp.pad(wb, ((0, n_pad - out_size), (0, k_pad - in_size)))

    def _dot(x_tile, w_tile):
        # (tb, tk) . (n_pad, tk) contracting the last axes -> (tb, n_pad).
        # Keeps the PyTorch (out, in) layout; no XLU transpose on the hot path.
        return jax.lax.dot_general(
            x_tile, w_tile,
            dimension_numbers=(((1,), (1,)), ((), ())),
            preferred_element_type=jnp.float32,
        )

    def _softmax_store(logits, o_ref):
        # TODO(synk): for very large out_size (logit row not VMEM-resident),
        # switch to an online softmax across out-size tiles.
        if n_pad != out_size:
            col = jax.lax.broadcasted_iota(jnp.int32, logits.shape, 1)
            logits = jnp.where(col < out_size, logits, -jnp.inf)
        m = jnp.max(logits, axis=-1, keepdims=True)
        e = jnp.exp(logits - m)
        denom = jnp.sum(e, axis=-1, keepdims=True)
        o_ref[...] = (e * pl.reciprocal(denom, approx=True)).astype(o_ref.dtype)

    if nk == 1:
        # Single K step: no accumulator scratch, no pl.when, 1-D grid.
        def kernel(x_ref, w_ref, o_ref):
            _softmax_store(_dot(x_ref[...], w_ref[...]), o_ref)

        grid = (nb,)
        in_specs = [
            pl.BlockSpec((tb, k_pad), lambda i: (i, 0)),        # x tile
            pl.BlockSpec((n_pad, k_pad), lambda i: (0, 0)),     # full weight slab
        ]
        out_specs = pl.BlockSpec((tb, n_pad), lambda i: (i, 0))
        scratch_shapes = []
        dim_sem = ("parallel",)
    else:
        def kernel(x_ref, w_ref, o_ref, acc_ref):
            k = pl.program_id(1)
            partial = _dot(x_ref[...], w_ref[...])

            @pl.when(k == 0)
            def _():
                acc_ref[...] = partial

            @pl.when(k > 0)
            def _():
                acc_ref[...] += partial

            @pl.when(k == nk - 1)
            def _():
                _softmax_store(acc_ref[...], o_ref)

        grid = (nb, nk)
        in_specs = [
            pl.BlockSpec((tb, tk), lambda i, k: (i, k)),        # x tile
            pl.BlockSpec((n_pad, tk), lambda i, k: (0, k)),     # weight K-slab
        ]
        out_specs = pl.BlockSpec((tb, n_pad), lambda i, k: (i, 0))
        scratch_shapes = [pltpu.VMEM((tb, n_pad), jnp.float32)]
        dim_sem = ("parallel", "arbitrary")

    out_padded = pl.pallas_call(
        kernel,
        out_shape=jax.ShapeDtypeStruct((b_pad, n_pad), out_dtype),
        grid_spec=pltpu.PrefetchScalarGridSpec(
            num_scalar_prefetch=0,
            grid=grid,
            in_specs=in_specs,
            out_specs=out_specs,
            scratch_shapes=scratch_shapes,
        ),
        compiler_params=pltpu.CompilerParams(dimension_semantics=dim_sem),
    )(xb, wb)

    if b_pad != B or n_pad != out_size:
        out_padded = out_padded[:B, :out_size]
    return out_padded


if __name__ == "__main__":
    key = jax.random.PRNGKey(0)
    kx, kw = jax.random.split(key)

    batch, in_size, out_size = 8, 32, 16

    x = jax.random.normal(kx, (batch, in_size), dtype=jnp.float32)
    # Deterministic "Kaiming-uniform-like" init for nn.Linear weight (out, in).
    bound = 1.0 / (in_size ** 0.5)
    w = jax.random.uniform(kw, (out_size, in_size), dtype=jnp.float32,
                           minval=-bound, maxval=bound)

    out = fc_forward(x, w)
    out = jax.block_until_ready(out)
    assert out.shape == (batch, out_size)

    # Tight reference: same bf16-quantized operands, f32 math.
    x_q = x.astype(jnp.bfloat16).astype(jnp.float32)
    w_q = w.astype(jnp.bfloat16).astype(jnp.float32)
    ref_q = jax.nn.softmax(x_q @ w_q.T, axis=1)
    assert jnp.allclose(out, ref_q, atol=5e-3, rtol=5e-3)

    # Loose reference: full-f32 PyTorch semantics.
    ref = jax.nn.softmax(x @ w.T, axis=1)
    assert jnp.allclose(out, ref, atol=3e-2, rtol=3e-2)

    # Rows must sum to 1 (approx reciprocal allows ~1e-3 slack).
    assert jnp.allclose(jnp.sum(out, axis=1), 1.0, atol=2e-3)

    print("KERNEL_OK")
</pallas_src>

<mosaic_0001>
module attributes {stable_mosaic.version = 11 : i64} {
  func.func @kernel(%arg0: i32, %arg1: memref<8x128xbf16, #tpu.memory_space<vmem>>, %arg2: memref<128x128xbf16, #tpu.memory_space<vmem>>, %arg3: memref<8x128xf32, #tpu.memory_space<vmem>>) attributes {dimension_semantics = [#tpu.dimension_semantics<parallel>], iteration_bounds = array<i64: 1>, scalar_prefetch = 0 : i64, scratch_operands = 0 : i64, tpu.core_type = #tpu.core_type<tc>, window_params = [{transform_indices = @transform_0, window_bounds = array<i64: 8, 128>}, {pipeline_mode = #tpu.pipeline_mode<synchronous>, transform_indices = @transform_1, window_bounds = array<i64: 128, 128>}, {transform_indices = @transform_2, window_bounds = array<i64: 8, 128>}]} {
    %c0 = arith.constant 0 : index
    %c0_0 = arith.constant 0 : index
    %0 = vector.load %arg1[%c0, %c0_0] : memref<8x128xbf16, #tpu.memory_space<vmem>>, vector<8x128xbf16>
    %c0_1 = arith.constant 0 : index
    %c0_2 = arith.constant 0 : index
    %1 = vector.load %arg2[%c0_1, %c0_2] : memref<128x128xbf16, #tpu.memory_space<vmem>>, vector<128x128xbf16>
    %cst = arith.constant dense<0.000000e+00> : vector<8x128xf32>
    %2 = tpu.matmul %0, %1, %cst {dimension_numbers = #tpu.dot_dimension_numbers<[1], [1], [0], [0], [0, 0, 1, 0], [], []>} : vector<8x128xbf16>, vector<128x128xbf16>, vector<8x128xf32> -> vector<8x128xf32>
    %3 = tpu.iota {dimensions = array<i32: 1>} : vector<8x128xi32>
    %c16_i32 = arith.constant 16 : i32
    %4 = vector.broadcast %c16_i32 : i32 to vector<8x128xi32>
    %5 = arith.cmpi slt, %3, %4 : vector<8x128xi32>
    %cst_3 = arith.constant 0xFF800000 : f32
    %6 = vector.broadcast %cst_3 : f32 to vector<8x128xf32>
    %7 = arith.select %5, %2, %6 : vector<8x128xi1>, vector<8x128xf32>
    %cst_4 = arith.constant dense<0xFF800000> : vector<8xf32>
    %8 = vector.multi_reduction <maximumf>, %7, %cst_4 [1] : vector<8x128xf32> to vector<8xf32>
    %9 = vector.shape_cast %8 : vector<8xf32> to vector<8x1xf32>
    %10 = vector.broadcast %9 : vector<8x1xf32> to vector<8x128xf32>
    %11 = arith.subf %7, %10 : vector<8x128xf32>
    %12 = math.exp %11 : vector<8x128xf32>
    %cst_5 = arith.constant dense<0.000000e+00> : vector<8xf32>
    %13 = vector.multi_reduction <add>, %12, %cst_5 [1] : vector<8x128xf32> to vector<8xf32>
    %14 = vector.shape_cast %13 : vector<8xf32> to vector<8x1xf32>
    %15 = tpu.reciprocal %14 {approx = true} : vector<8x1xf32> -> vector<8x1xf32>
    %16 = vector.broadcast %15 : vector<8x1xf32> to vector<8x128xf32>
    %17 = arith.mulf %12, %16 : vector<8x128xf32>
    %c0_6 = arith.constant 0 : index
    %c0_7 = arith.constant 0 : index
    %18 = vector.load %arg3[%c0_6, %c0_7] : memref<8x128xf32, #tpu.memory_space<vmem>>, vector<8x128xf32>
    tpu.vector_store %arg3[%c0_6, %c0_7], %17 {strides = array<i32>} : memref<8x128xf32, #tpu.memory_space<vmem>>, vector<8x128xf32>,
    return
  }
  func.func @transform_0(%arg0: i32) -> (i32, i32) {
    %c0_i32 = arith.constant 0 : i32
    %c0_i32_0 = arith.constant 0 : i32
    return %arg0, %c0_i32 : i32, i32
  }
  func.func @transform_1(%arg0: i32) -> (i32, i32) {
    %c0_i32 = arith.constant 0 : i32
    %c0_i32_0 = arith.constant 0 : i32
    %c0_i32_1 = arith.constant 0 : i32
    return %c0_i32, %c0_i32_0 : i32, i32
  }
  func.func @transform_2(%arg0: i32) -> (i32, i32) {
    %c0_i32 = arith.constant 0 : i32
    %c0_i32_0 = arith.constant 0 : i32
    return %arg0, %c0_i32 : i32, i32
  }
}

</mosaic_0001>

<bundles_post_ra>
// kernel: tpu_custom_call.1
= control target key start
LH: loop header
LB: loop body
LE: loop exit
PB: predicated region body
PF: predicated region fallthrough
CT: control target
= control target key end

     0   :  { %7 = vsyncpa [#allocation3], 0  ;;  %s327_s0 = inlined_call_operand.hbm [shape: bf16[8,128], index: 0, kind: input, shape index: {}]   ;;  %s328_s1 = inlined_call_operand.hbm [shape: bf16[128,128], index: 1, kind: input, shape index: {}]   ;;  %s329_s2 = inlined_call_operand.hbm [shape: f32[8,128], index: 2, kind: output, shape index: {}]  }
   0x1   :  { %8 = vsyncpa [#allocation6], 0 }
   0x2   :  { %9 = vsyncpa [#allocation4], 0  ;;  %s296_s9 = smov [#allocation2]   ;;  %s297_s11 = smov [#allocation5]  }
   0x3   :  { %s16_s10 = sshll.u32 %s296_s9, 4  ;;  %s25_s12 = sshll.u32 %s297_s11, 4  ;;  %s17_s10 = int_to_ptr.vmem [resolvable:$true] %s16_s10  ;;  %s26_s12 = int_to_ptr.vmem [resolvable:$true] %s25_s12 }
   0x4   :  { %s238_s13 = scalar_lea.vmem %s17_s10, 64  ;;  %p243_p1 = scmp.lt.s32.totalorder %s17_s10, %s17_s10 }
   0x5   :  { %p239_p0 = scmp.ne.s32.totalorder %s17_s10, %s238_s13  ;;  %p244_p2 = scmp.lt.s32.totalorder %s238_s13, %s238_s13 }
   0x7   :  { %p245_p3 = por %p244_p2, %p243_p1 }
   0x9   :  { %p246_p4 = pnand %p245_p3, %p239_p0 }
   0xb   :  { %249 = shalt.err (!%p246_p4)
}
   0xc   :  { %19 = dma.hbm_to_vmem [thread:$0]  %s327_s0, 64, %s17_s10, [#allocation3]  }
   0xd   :  { %s258_s16 = scalar_lea.vmem %s26_s12, 1024  ;;  %p263_p6 = scmp.lt.s32.totalorder %s26_s12, %s26_s12 }
   0xe   :  { %p259_p5 = scmp.ne.s32.totalorder %s26_s12, %s258_s16  ;;  %p264_p7 = scmp.lt.s32.totalorder %s258_s16, %s258_s16 }
  0x10   :  { %p265_p8 = por %p264_p7, %p263_p6 }
  0x12   :  { %p266_p9 = pnand %p265_p8, %p259_p5 }
  0x14   :  { %269 = shalt.err (!%p266_p9)
}
  0x15   :  { %s298_s17 = smov 64   ;;  %s299_s18 = smov 4  }
  0x16   :  { %31 = dma.hbm_to_vmem [thread:$0]  %s328_s1, 1024, %s26_s12, [#allocation6], %s298_s17, %s298_s17, %s299_s18  }
  0x17   :  { %290 = dma.done.wait [#allocation3], 64  }
  0x18   :  { %291 = vsyncadd [#allocation3], 4294967232 }
  0x19   :  { %292 = dma.done.wait [#allocation6], 1024  }
  0x1a   :  { %293 = vsyncadd [#allocation6], 4294966272  ;;  %v300_v0 = vmov 0.0   ;;  %vm301_vm0 = vmmov 0   ;;  %v218_v1 = vld [vmem:[#allocation5 + $0x38] sm:$0xff]   ;;  %v219_v2 = vld [vmem:[#allocation5 + $0x30] sm:$0xff]   ;;  %v144_v10 = vlaneseq }
  0x1b   :  { %191 = vmatprep.subr.bf16.mxu0 %v300_v0  ;;  %207 = vmatprep.mubr.msk.bf16.mxu0 %vm301_vm0, %v300_v0  ;;  %v220_v3 = vld [vmem:[#allocation5 + $0x28] sm:$0xff]   ;;  %v221_v4 = vld [vmem:[#allocation5 + $0x20] sm:$0xff]   ;;  %v222_v5 = vld [vmem:[#allocation5 + $0x18] sm:$0xff]   ;;  %s302_s0 = smov [#allocation7]  }
  0x1c   :  { %192 = vmatpush3.bf16.xpose.msra.mxu0 %v218_v1  ;;  %v223_v6 = vld [vmem:[#allocation5 + $0x10] sm:$0xff]   ;;  %v224_v7 = vld [vmem:[#allocation5 + $0x8] sm:$0xff]   ;;  %v225_v8 = vld [vmem:[#allocation5] sm:$0xff]   ;;  %v145_v11 = vand.u32 127, %v144_v10  ;;  %s164_s1 = sshll.u32 %s302_s0, 4  ;;  %s165_s1 = int_to_ptr.vmem [resolvable:$true] %s164_s1 }
  0x1d   :  { %193 = vmatprep.subr.bf16.mxu0 %v300_v0  ;;  %v39_v9 = vld [vmem:[#allocation2] sm:$0xf]  ;;  %s270_s21 = scalar_lea.vmem %s165_s1, 128  ;;  %p275_p11 = scmp.lt.s32.totalorder %s165_s1, %s165_s1 }
  0x1e   :  { %vm146_vm1 = vcmp.lt.s32.totalorder %v145_v11, 16  ;;  %p271_p10 = scmp.ne.s32.totalorder %s165_s1, %s270_s21  ;;  %p276_p12 = scmp.lt.s32.totalorder %s270_s21, %s270_s21 }
  0x20   :  { %p277_p13 = por %p276_p12, %p275_p11 }
  0x22   :  { %p278_p0 = pnand %p277_p13, %p271_p10 }
  0x24   :  { %194 = vmatpush3.bf16.xpose.msra.mxu0 %v219_v2 }
  0x25   :  { %195 = vmatprep.subr.bf16.mxu0 %v300_v0 }
  0x2c   :  { %196 = vmatpush3.bf16.xpose.msra.mxu0 %v220_v3 }
  0x2d   :  { %197 = vmatprep.subr.bf16.mxu0 %v300_v0 }
  0x34   :  { %198 = vmatpush3.bf16.xpose.msra.mxu0 %v221_v4 }
  0x35   :  { %199 = vmatprep.subr.bf16.mxu0 %v300_v0 }
  0x3c   :  { %200 = vmatpush3.bf16.xpose.msra.mxu0 %v222_v5 }
  0x3d   :  { %201 = vmatprep.subr.bf16.mxu0 %v300_v0 }
  0x44   :  { %202 = vmatpush3.bf16.xpose.msra.mxu0 %v223_v6 }
  0x45   :  { %203 = vmatprep.subr.bf16.mxu0 %v300_v0 }
  0x4c   :  { %204 = vmatpush3.bf16.xpose.msra.mxu0 %v224_v7 }
  0x4d   :  { %205 = vmatprep.subr.bf16.mxu0 %v300_v0 }
  0x54   :  { %206 = vmatpush3.bf16.xpose.msra.mxu0 %v225_v8 }
  0x5b   :  { %208 = vmatmul.mubr.bf16.vlgmr.msra.gmra.mxu0 %v39_v9 }
 0x11b   :  { %v138_v12 = vpop.f32.mrf.mxu0 }
 0x11c   :  { %v147_v13 = vsel %vm146_vm1, %v138_v12, -inf }
 0x11d   :  { %148 = vmax.xlane.f32.xlu0 %v147_v13  ;;  %v209_v14 = vpop.f32.mrf.mxu0 }
 0x11f   :  { %v141_v15 = vpop.f32.mrf.mxu0 }
 0x121   :  { %v210_v16 = vpop.f32.mrf.mxu0 }
 0x1a6   :  { %v149_v17 = vpop.xlane.xlu0 %148 }
 0x1a7   :  { %v150_v18 = vsub.f32 %v147_v13, %v149_v17 }
 0x1a9   :  { %v151_v19 = vmul.f32 1.442695, %v150_v18 }
 0x1ab   :  { %226 = vpow2.f32 %v151_v19 }
 0x1b8   :  { %v227_v20 = vpop.eup %226 }
 0x1b9   :  { %153 = vadd.xlane.f32.xlu0 %v227_v20 }
 0x242   :  { %v154_v21 = vpop.xlane.xlu0 %153 }
 0x243   :  { %228 = vrcp.f32 %v154_v21 }
 0x250   :  { %v229_v22 = vpop.eup %228 }
 0x251   :  { %v156_v23 = vmul.f32 %v229_v22, %v227_v20 }
 0x253   :  { %157 = vst [vmem:[#allocation7] sm:$0xff] %v156_v23 }
 0x254   :  { %281 = shalt.err (!%p278_p0)
}
 0x255   :  { %167 = dma.vmem_to_hbm [thread:$0]  %s165_s1, 128, %s329_s2, [#allocation4]  }
 0x256   :  { %294 = dma.done.wait [#allocation4], 128  }
 0x257   :  { %295 = vsyncadd [#allocation4], 4294967168 }
 0x258   :  { %171 = vsyncpa [#allocation3], 1 }
 0x259   :  { %172 = vsyncpa [#allocation6], 1 }
 0x25a   :  { %173 = vsyncpa [#allocation4], 1 }

</bundles_post_ra>
